<compile_context>
chip_gen: v7x
topology: tpu7x:2x2x1
jax: 0.10.0
libtpu: 0.0.40
codegen_flags: <defaults>
</compile_context>

<pallas_src>
import jax
import jax.numpy as jnp
from jax.experimental import pallas as pl
from jax.experimental.pallas import tpu as pltpu


def _round_up(x, m):
    return ((x + m - 1) // m) * m


def _cdiv(a, b):
    return -(-a // b)


def _vmem_capacity_bytes():
    # Per-TensorCore VMEM capacity; fall back to the most conservative value (v7x: 64 MiB).
    try:
        cap = getattr(pltpu.get_tpu_info(), "vmem_capacity_bytes", None)
        if cap:
            return int(cap)
    except Exception:
        pass
    return 64 << 20


# ---------------------------------------------------------------------------
# Kernels
# ---------------------------------------------------------------------------

def _fold_kernel(x_ref, w_ref, b_ref, o_ref):
    # Single fused affine map: [tb, K] @ [K, N] + [1, N]  (bias kept f32, fused into the store).
    y = jnp.dot(x_ref[...], w_ref[...], preferred_element_type=jnp.float32)
    o_ref[...] = (y + b_ref[...]).astype(o_ref.dtype)


def _fold_kernel_ktiled(x_ref, w_ref, b_ref, o_ref, acc_ref):
    # Same affine map with the contraction (in_dim) tiled over the last ("arbitrary") grid axis.
    @pl.when(pl.program_id(1) == 0)
    def _():
        acc_ref[...] = jnp.zeros_like(acc_ref)

    acc_ref[...] += jnp.dot(x_ref[...], w_ref[...], preferred_element_type=jnp.float32)

    @pl.when(pl.program_id(1) == pl.num_programs(1) - 1)
    def _():
        o_ref[...] = (acc_ref[...] + b_ref[...]).astype(o_ref.dtype)


def _unfused_kernel(x_ref, w1_ref, b1_ref, w2_ref, b2_ref, o_ref):
    # Two stacked linears with both weights resident in VMEM (small-batch path).
    h = jnp.dot(x_ref[...], w1_ref[...], preferred_element_type=jnp.float32) + b1_ref[...]
    y = jnp.dot(h.astype(w2_ref.dtype), w2_ref[...], preferred_element_type=jnp.float32)
    o_ref[...] = (y + b2_ref[...]).astype(o_ref.dtype)


# ---------------------------------------------------------------------------
# Wrapper
# ---------------------------------------------------------------------------

def simclr_head(x, w1, b1, w2, b2, *, tb=512, tk=None, param_dtype=None, fold=None):
    """SimCLRHead forward: x [..., in_dim] -> [..., bottleneck_dim].

    w1: [in_dim, hidden], b1: [1, hidden], w2: [hidden, bottleneck], b2: [1, bottleneck]
    (weights pre-transposed vs. PyTorch nn.Linear).

    tb:          target batch tile (rows per grid step).
    tk:          force a contraction tile (must divide in_dim and be a multiple of 128);
                 None -> auto (full in_dim unless the VMEM budget forces K tiling).
    param_dtype: optional MXU feed dtype for x / weights (e.g. jnp.bfloat16). By default the
                 producer dtype of x is followed, so no extra wrapper-side cast pass is added.
    fold:        None -> auto (fold the two linears only when B >= 2 * bottleneck_dim);
                 True/False overrides.
    """
    orig_shape = x.shape
    in_dim = orig_shape[-1]
    if x.ndim != 2:
        x = x.reshape(-1, in_dim)
    B = x.shape[0]
    hidden_dim = w1.shape[1]
    bottleneck_dim = w2.shape[1]
    out_dtype = x.dtype

    # MXU feed dtype: explicit request, else follow the producer dtype of x (so an x.astype()
    # wrapper pass is only paid when the caller explicitly asks for a different dtype).
    if param_dtype is not None:
        compute_dtype = jnp.dtype(param_dtype)
    elif x.dtype == jnp.bfloat16:
        compute_dtype = jnp.dtype(jnp.bfloat16)
    else:
        compute_dtype = jnp.dtype(jnp.float32)

    isz_c = compute_dtype.itemsize
    isz_o = jnp.dtype(out_dtype).itemsize

    vmem_budget = max(_vmem_capacity_bytes() - (16 << 20), 24 << 20)

    # ---- batch tile: big, multiple of 8; >= 2 grid steps so v7x's 2 TCs both get work ----
    tb_eff = max(8, min(_round_up(tb, 8), _round_up(B, 8)))
    if B >= 16 and _cdiv(B, tb_eff) < 2:
        tb_eff = max(8, _round_up(_cdiv(B, 2), 8))

    # ---- fold-vs-unfused decision (fold cost is not amortized: weights change every step) ----
    use_fold = (B >= 2 * bottleneck_dim) if fold is None else bool(fold)

    def _unfused_est(tbv):
        return (2 * (in_dim * hidden_dim + hidden_dim * bottleneck_dim) * isz_c
                + 2 * tbv * in_dim * isz_c
                + 2 * tbv * bottleneck_dim * isz_o
                + tbv * hidden_dim * 4)  # f32 hidden intermediate

    if not use_fold:
        tbv = tb_eff
        while tbv > 8 and _unfused_est(tbv) > vmem_budget:
            tbv = max(8, _round_up(tbv // 2, 8))
        if _unfused_est(tbv) > vmem_budget and fold is None:
            use_fold = True  # resident w1/w2 do not fit -> fold instead
        else:
            tb_eff = tbv

    x_k = x if x.dtype == compute_dtype else x.astype(compute_dtype)

    if use_fold:
        # Exact fold of the two linears (valid because there is NO activation between them).
        # TODO(synk): if an activation / BatchNorm is ever inserted between the layers, the fold
        # is no longer valid and the unfused kernel must be used unconditionally.
        w1_c = w1 if w1.dtype == compute_dtype else w1.astype(compute_dtype)
        w2_c = w2 if w2.dtype == compute_dtype else w2.astype(compute_dtype)
        w = jnp.dot(w1_c, w2_c, preferred_element_type=jnp.float32).astype(compute_dtype)
        b = (jnp.dot(b1.astype(jnp.float32), w2.astype(jnp.float32),
                     preferred_element_type=jnp.float32)
             + b2.astype(jnp.float32))  # bias stays f32 (tiny)

        def _fold_est(tbv, tkv, ktiled):
            e = (2 * tbv * tkv * isz_c                 # x tile (double-buffered)
                 + 2 * tkv * bottleneck_dim * isz_c    # W tile (double-buffered by default)
                 + 2 * tbv * bottleneck_dim * isz_o    # out tile
                 + 2 * max(bottleneck_dim, 128) * 4)   # f32 bias row
            if ktiled:
                e += tbv * bottleneck_dim * 4          # f32 accumulator scratch
            return e

        # ---- contraction tile: prefer full in_dim; tile K (not the batch) if VMEM is short ----
        if tk is not None:
            tk_eff = int(tk)
            if tk_eff != in_dim:
                assert in_dim % tk_eff == 0 and tk_eff % 128 == 0, (
                    "tk must divide in_dim and be a multiple of 128")
        elif _fold_est(tb_eff, in_dim, False) <= vmem_budget:
            tk_eff = in_dim
        else:
            tk_eff = None
            for cand in range(_round_up(in_dim, 128) - 128, 0, -128):
                if in_dim % cand == 0 and _fold_est(tb_eff, cand, True) <= vmem_budget:
                    tk_eff = cand
                    break
            if tk_eff is None:
                # No clean K divisor available: fall back to shrinking the batch tile instead.
                tk_eff = in_dim
                while tb_eff > 8 and _fold_est(tb_eff, in_dim, False) > vmem_budget:
                    tb_eff = max(8, _round_up(tb_eff // 2, 8))

        nb = _cdiv(B, tb_eff)
        flops = 2 * B * in_dim * bottleneck_dim
        bytes_accessed = (B * in_dim * isz_c
                          + in_dim * bottleneck_dim * isz_c
                          + bottleneck_dim * 4
                          + B * bottleneck_dim * isz_o)
        cost = pl.CostEstimate(flops=flops, transcendentals=0, bytes_accessed=bytes_accessed)

        if tk_eff == in_dim:
            vmem_limit = int(min(max(_fold_est(tb_eff, in_dim, False) + (8 << 20), 32 << 20),
                                 vmem_budget))
            out = pl.pallas_call(
                _fold_kernel,
                out_shape=jax.ShapeDtypeStruct((B, bottleneck_dim), out_dtype),
                grid=(nb,),
                in_specs=[
                    pl.BlockSpec((tb_eff, in_dim), lambda i: (i, 0)),          # x tile
                    pl.BlockSpec((in_dim, bottleneck_dim), lambda i: (0, 0)),  # folded W (resident)
                    pl.BlockSpec((1, bottleneck_dim), lambda i: (0, 0)),       # folded bias (f32)
                ],
                out_specs=pl.BlockSpec((tb_eff, bottleneck_dim), lambda i: (i, 0)),
                compiler_params=pltpu.CompilerParams(
                    dimension_semantics=("parallel",),
                    vmem_limit_bytes=vmem_limit,
                ),
                cost_estimate=cost,
            )(x_k, w, b)
        else:
            nk = in_dim // tk_eff
            vmem_limit = int(min(max(_fold_est(tb_eff, tk_eff, True) + (8 << 20), 32 << 20),
                                 vmem_budget))
            out = pl.pallas_call(
                _fold_kernel_ktiled,
                out_shape=jax.ShapeDtypeStruct((B, bottleneck_dim), out_dtype),
                grid=(nb, nk),
                in_specs=[
                    pl.BlockSpec((tb_eff, tk_eff), lambda i, k: (i, k)),          # x tile
                    pl.BlockSpec((tk_eff, bottleneck_dim), lambda i, k: (k, 0)),  # folded W tile
                    pl.BlockSpec((1, bottleneck_dim), lambda i, k: (0, 0)),       # folded bias
                ],
                out_specs=pl.BlockSpec((tb_eff, bottleneck_dim), lambda i, k: (i, 0)),
                scratch_shapes=[pltpu.VMEM((tb_eff, bottleneck_dim), jnp.float32)],
                compiler_params=pltpu.CompilerParams(
                    dimension_semantics=("parallel", "arbitrary"),
                    vmem_limit_bytes=vmem_limit,
                ),
                cost_estimate=cost,
            )(x_k, w, b)
    else:
        # Small-batch path: keep the two matmuls, both weights resident in VMEM.
        w1_c = w1 if w1.dtype == compute_dtype else w1.astype(compute_dtype)
        w2_c = w2 if w2.dtype == compute_dtype else w2.astype(compute_dtype)
        b1_f = b1.astype(jnp.float32)
        b2_f = b2.astype(jnp.float32)

        nb = _cdiv(B, tb_eff)
        flops = 2 * B * (in_dim * hidden_dim + hidden_dim * bottleneck_dim)
        bytes_accessed = (B * in_dim * isz_c
                          + (in_dim * hidden_dim + hidden_dim * bottleneck_dim) * isz_c
                          + (hidden_dim + bottleneck_dim) * 4
                          + B * bottleneck_dim * isz_o)
        vmem_limit = int(min(max(_unfused_est(tb_eff) + (8 << 20), 32 << 20), vmem_budget))

        out = pl.pallas_call(
            _unfused_kernel,
            out_shape=jax.ShapeDtypeStruct((B, bottleneck_dim), out_dtype),
            grid=(nb,),
            in_specs=[
                pl.BlockSpec((tb_eff, in_dim), lambda i: (i, 0)),              # x tile
                pl.BlockSpec((in_dim, hidden_dim), lambda i: (0, 0)),          # w1 (resident)
                pl.BlockSpec((1, hidden_dim), lambda i: (0, 0)),               # b1 (f32)
                pl.BlockSpec((hidden_dim, bottleneck_dim), lambda i: (0, 0)),  # w2 (resident)
                pl.BlockSpec((1, bottleneck_dim), lambda i: (0, 0)),           # b2 (f32)
            ],
            out_specs=pl.BlockSpec((tb_eff, bottleneck_dim), lambda i: (i, 0)),
            compiler_params=pltpu.CompilerParams(
                dimension_semantics=("parallel",),
                vmem_limit_bytes=vmem_limit,
            ),
            cost_estimate=pl.CostEstimate(flops=flops, transcendentals=0,
                                          bytes_accessed=bytes_accessed),
        )(x_k, w1_c, b1_f, w2_c, b2_f)

    return out.reshape(orig_shape[:-1] + (bottleneck_dim,))


def reference_forward(x, w1, b1, w2, b2):
    # Pure-JAX reference matching PyTorch nn.Linear semantics (weights already transposed).
    h = x @ w1 + b1
    return h @ w2 + b2


if __name__ == "__main__":
    # Small shapes consistent with the module (in_dim -> hidden_dim -> bottleneck_dim),
    # scaled down but TPU-tile friendly.
    in_dim, hidden_dim, bottleneck_dim = 256, 256, 128
    B = 500  # deliberately ragged: not a multiple of any batch tile

    key = jax.random.PRNGKey(0)
    k_x, k_w1, k_b1, k_w2, k_b2 = jax.random.split(key, 5)

    x = jax.random.normal(k_x, (B, in_dim), dtype=jnp.float32)
    # Deterministic parameter init (roughly matching nn.Linear's uniform scale).
    w1 = jax.random.uniform(k_w1, (in_dim, hidden_dim), dtype=jnp.float32,
                            minval=-1.0, maxval=1.0) / jnp.sqrt(in_dim)
    b1 = jax.random.uniform(k_b1, (1, hidden_dim), dtype=jnp.float32,
                            minval=-1.0, maxval=1.0) / jnp.sqrt(in_dim)
    w2 = jax.random.uniform(k_w2, (hidden_dim, bottleneck_dim), dtype=jnp.float32,
                            minval=-1.0, maxval=1.0) / jnp.sqrt(hidden_dim)
    b2 = jax.random.uniform(k_b2, (1, bottleneck_dim), dtype=jnp.float32,
                            minval=-1.0, maxval=1.0) / jnp.sqrt(hidden_dim)

    ref = reference_forward(x, w1, b1, w2, b2)

    # 1) Small batch -> unfused two-matmul path (fold guard: B < 2*bottleneck).
    out_small = jax.block_until_ready(simclr_head(x[:16], w1, b1, w2, b2))
    assert out_small.shape == (16, bottleneck_dim)
    assert jnp.allclose(out_small, ref[:16], atol=2e-3, rtol=2e-3), "mismatch (unfused path)"

    # 2) Large ragged batch -> folded path, masked last tile, no pad/slice HBM round-trips.
    out_fold = jax.block_until_ready(simclr_head(x, w1, b1, w2, b2))
    assert out_fold.shape == (B, bottleneck_dim)
    assert jnp.allclose(out_fold, ref, atol=2e-3, rtol=2e-3), "mismatch (folded path)"

    # 3) Folded path with forced K tiling (exercises the acc scratch / 'arbitrary' K axis).
    out_kt = jax.block_until_ready(simclr_head(x, w1, b1, w2, b2, tk=128))
    assert out_kt.shape == (B, bottleneck_dim)
    assert jnp.allclose(out_kt, ref, atol=2e-3, rtol=2e-3), "mismatch (K-tiled folded path)"

    # 4) bf16 producer -> bf16 MXU feed chosen automatically (f32 accumulation, f32 bias).
    out_bf16 = jax.block_until_ready(simclr_head(x.astype(jnp.bfloat16), w1, b1, w2, b2))
    assert out_bf16.shape == (B, bottleneck_dim)
    assert bool(jnp.all(jnp.isfinite(out_bf16.astype(jnp.float32)))), "non-finite (bf16 path)"
    assert jnp.allclose(out_bf16.astype(jnp.float32), ref, atol=1e-1, rtol=1e-1), \
        "mismatch (bf16 path)"

    print("KERNEL_OK")
</pallas_src>

<mosaic_0001>
module attributes {stable_mosaic.version = 11 : i64} {
  func.func @_unfused_kernel(%arg0: i32, %arg1: memref<8x256xf32, #tpu.memory_space<vmem>>, %arg2: memref<256x256xf32, #tpu.memory_space<vmem>>, %arg3: memref<1x256xf32, #tpu.memory_space<vmem>>, %arg4: memref<256x128xf32, #tpu.memory_space<vmem>>, %arg5: memref<1x128xf32, #tpu.memory_space<vmem>>, %arg6: memref<8x128xf32, #tpu.memory_space<vmem>>) attributes {dimension_semantics = [#tpu.dimension_semantics<parallel>], iteration_bounds = array<i64: 2>, scalar_prefetch = 0 : i64, scratch_operands = 0 : i64, tpu.core_type = #tpu.core_type<tc>, window_params = [{transform_indices = @transform_0, window_bounds = array<i64: 8, 256>}, {pipeline_mode = #tpu.pipeline_mode<synchronous>, transform_indices = @transform_1, window_bounds = array<i64: 256, 256>}, {pipeline_mode = #tpu.pipeline_mode<synchronous>, transform_indices = @transform_2, window_bounds = array<i64: 1, 256>}, {pipeline_mode = #tpu.pipeline_mode<synchronous>, transform_indices = @transform_3, window_bounds = array<i64: 256, 128>}, {pipeline_mode = #tpu.pipeline_mode<synchronous>, transform_indices = @transform_4, window_bounds = array<i64: 1, 128>}, {transform_indices = @transform_5, window_bounds = array<i64: 8, 128>}]} {
    %c0 = arith.constant 0 : index
    %c0_0 = arith.constant 0 : index
    %0 = vector.load %arg1[%c0, %c0_0] : memref<8x256xf32, #tpu.memory_space<vmem>>, vector<8x256xf32>
    %c0_1 = arith.constant 0 : index
    %c0_2 = arith.constant 0 : index
    %1 = vector.load %arg2[%c0_1, %c0_2] : memref<256x256xf32, #tpu.memory_space<vmem>>, vector<256x256xf32>
    %cst = arith.constant dense<0.000000e+00> : vector<8x256xf32>
    %2 = tpu.matmul %0, %1, %cst {dimension_numbers = #tpu.dot_dimension_numbers<[1], [0], [0], [1], [0, 0, 1, 1], [], []>} : vector<8x256xf32>, vector<256x256xf32>, vector<8x256xf32> -> vector<8x256xf32>
    %c0_3 = arith.constant 0 : index
    %c0_4 = arith.constant 0 : index
    %3 = vector.load %arg3[%c0_3, %c0_4] : memref<1x256xf32, #tpu.memory_space<vmem>>, vector<1x256xf32>
    %4 = vector.broadcast %3 : vector<1x256xf32> to vector<8x256xf32>
    %5 = arith.addf %2, %4 : vector<8x256xf32>
    %c0_5 = arith.constant 0 : index
    %c0_6 = arith.constant 0 : index
    %6 = vector.load %arg4[%c0_5, %c0_6] : memref<256x128xf32, #tpu.memory_space<vmem>>, vector<256x128xf32>
    %cst_7 = arith.constant dense<0.000000e+00> : vector<8x128xf32>
    %7 = tpu.matmul %5, %6, %cst_7 {dimension_numbers = #tpu.dot_dimension_numbers<[1], [0], [0], [1], [0, 0, 1, 1], [], []>} : vector<8x256xf32>, vector<256x128xf32>, vector<8x128xf32> -> vector<8x128xf32>
    %c0_8 = arith.constant 0 : index
    %c0_9 = arith.constant 0 : index
    %8 = vector.load %arg5[%c0_8, %c0_9] : memref<1x128xf32, #tpu.memory_space<vmem>>, vector<1x128xf32>
    %9 = vector.broadcast %8 : vector<1x128xf32> to vector<8x128xf32>
    %10 = arith.addf %7, %9 : vector<8x128xf32>
    %c0_10 = arith.constant 0 : index
    %c0_11 = arith.constant 0 : index
    %11 = vector.load %arg6[%c0_10, %c0_11] : memref<8x128xf32, #tpu.memory_space<vmem>>, vector<8x128xf32>
    tpu.vector_store %arg6[%c0_10, %c0_11], %10 {strides = array<i32>} : memref<8x128xf32, #tpu.memory_space<vmem>>, vector<8x128xf32>,
    return
  }
  func.func @transform_0(%arg0: i32) -> (i32, i32) {
    %c0_i32 = arith.constant 0 : i32
    %c0_i32_0 = arith.constant 0 : i32
    return %arg0, %c0_i32 : i32, i32
  }
  func.func @transform_1(%arg0: i32) -> (i32, i32) {
    %c0_i32 = arith.constant 0 : i32
    %c0_i32_0 = arith.constant 0 : i32
    %c0_i32_1 = arith.constant 0 : i32
    return %c0_i32, %c0_i32_0 : i32, i32
  }
  func.func @transform_2(%arg0: i32) -> (i32, i32) {
    %c0_i32 = arith.constant 0 : i32
    %c0_i32_0 = arith.constant 0 : i32
    %c0_i32_1 = arith.constant 0 : i32
    return %c0_i32, %c0_i32_0 : i32, i32
  }
  func.func @transform_3(%arg0: i32) -> (i32, i32) {
    %c0_i32 = arith.constant 0 : i32
    %c0_i32_0 = arith.constant 0 : i32
    %c0_i32_1 = arith.constant 0 : i32
    return %c0_i32, %c0_i32_0 : i32, i32
  }
  func.func @transform_4(%arg0: i32) -> (i32, i32) {
    %c0_i32 = arith.constant 0 : i32
    %c0_i32_0 = arith.constant 0 : i32
    %c0_i32_1 = arith.constant 0 : i32
    return %c0_i32, %c0_i32_0 : i32, i32
  }
  func.func @transform_5(%arg0: i32) -> (i32, i32) {
    %c0_i32 = arith.constant 0 : i32
    %c0_i32_0 = arith.constant 0 : i32
    return %arg0, %c0_i32 : i32, i32
  }
}

</mosaic_0001>

<bundles_post_ra>
// kernel: tpu_custom_call.1
= control target key start
LH: loop header
LB: loop body
LE: loop exit
PB: predicated region body
PF: predicated region fallthrough
CT: control target
= control target key end

     0   :  { %10 = vsyncpa [#allocation3], 0  ;;  %s1289_s0 = inlined_call_operand.hbm [shape: f32[16,256], index: 0, kind: input, shape index: {}]   ;;  %s1290_s1 = inlined_call_operand.hbm [shape: f32[256,256], index: 1, kind: input, shape index: {}]   ;;  %s1291_s2 = inlined_call_operand.vmem [shape: f32[1,256], index: 2, kind: input, shape index: {}]   ;;  %s1292_s3 = inlined_call_operand.hbm [shape: f32[256,128], index: 3, kind: input, shape index: {}]   ;;  %s1293_s4 = inlined_call_operand.vmem [shape: f32[1,128], index: 4, kind: input, shape index: {}]   ;;  %s1294_s5 = inlined_call_operand.hbm [shape: f32[16,128], index: 5, kind: output, shape index: {}]  }
   0x1   :  { %12 = vsyncpa [#allocation3 + $0x1], 0 }
   0x2   :  { %13 = vsyncpa [#allocation6], 0 }
   0x3   :  { %14 = vsyncpa [#allocation4], 0 }
   0x4   :  { %16 = vsyncpa [#allocation4 + $0x1], 0  ;;  %s1049_s18 = smov 0   ;;  %s1051_s19 = smov 0  }
   0x5   :  { %s1053_s20 = smov 0   ;;  %s1055_s21 = smov 0  }
   0x6 LB: > { %s1070_s22 = sadd.s32 4294967295, %s1009_s21   ;;  %s632_s23 = sadd.s32 4294967294, %s1009_s21   ;;  %s1009_s21 = sphi %s1055_s21, %s1314_s21   ;;  %s1005_s20 = sphi %s1053_s20, %s1313_s20   ;;  %s1001_s19 = sphi %s1051_s19, %s1312_s19   ;;  %s997_s18 = sphi %s1049_s18, %s1311_s18  }
   0x7   : > { %p42_p0 = scmp.ne.s32.totalorder %s1001_s19, %s997_s18  ;;  %p1295_p1 = scmp.eq.s32.totalorder %s1070_s22, 0 }
   0x8   : > { %p156_p3 = scmp.eq.s32.totalorder %s632_s23, 1  ;;  %p633_p5 = scmp.ge.s32.totalorder %s1009_s21, 1 }
   0x9   : > { %p1079_p4 = por %p1295_p1, %p42_p0  ;;  %p163_p7 = scmp.lt.s32.totalorder %s1009_s21, 3 }
   0xa   : > { %p1084_p6 = por %p156_p3, %p42_p0  ;;  %s1011_s27 = smov [#allocation5]  }
   0xb   : > { %s1298_s24 = scalar_select %p1079_p4, 1, 0 }
   0xc   : > { %s1299_s25 = scalar_select %p1084_p6, 1, 0 }
   0xd   : > { %p1089_p8 = pnand %p633_p5, %p163_p7  ;;  %s175_s28 = sshll.u32 %s1011_s27, 4  ;;  %s1093_s28 = int_to_ptr.vmem [resolvable:$true] %s175_s28 }
   0xe   : > { %s1012_s30 = smov [#allocation7]   ;;  %s853_s9 = scalar_lea.hbm %s1290_s1, 8192 }
   0xf   : > { %p794_p9 = pneg %p1089_p8  ;;  %s191_s6 = sshll.u32 %s1012_s30, 4  ;;  %s1104_s6 = int_to_ptr.vmem [resolvable:$true] %s191_s6 }
  0x10   : > { %p854_p12 = scmp.ne.s32.totalorder %s1290_s1, %s853_s9  ;;  %p860_p5 = scmp.lt.u32.totalorder %s853_s9, %s1290_s1 }
  0x11   : > { %p1100_p11 = pnand %p794_p9, %p1295_p1 }
  0x13   : > { %p855_p13 = pneg %p1100_p11 }
  0x15   : > { %p856_p0 = pnand %p855_p13, %p854_p12 }
  0x17   : > { %p857_p3 = pneg %p856_p0 }
  0x19   : > { %p862_p7 = pnand %p860_p5, %p857_p3 }
  0x1b   : > { %865 = shalt.err (!%p862_p7)
}
  0x1c   : > { %s866_s14 = scalar_lea.vmem %s1093_s28, 8192  ;;  %p874_p2 = scmp.lt.s32.totalorder %s1093_s28, %s1093_s28 }
  0x1d   : > { %p867_p9 = scmp.ne.s32.totalorder %s1093_s28, %s866_s14  ;;  %p875_p12 = scmp.lt.s32.totalorder %s866_s14, %s866_s14 }
  0x1f   : > { %p869_p10 = pnand %p867_p9, %p855_p13  ;;  %p876_p0 = por %p875_p12, %p874_p2 }
  0x21   : > { %p870_p1 = pneg %p869_p10 }
  0x23   : > { %p877_p6 = pnand %p876_p0, %p870_p1 }
  0x25   : > { %880 = shalt.err (!%p877_p6)
}
  0x26   : > { %s1013_s15 = smov 256   ;;  %s1014_s16 = smov 16  }
  0x27   : > { %797 = dma.hbm_to_vmem [thread:$0]  (!%p1100_p11), %s1290_s1, 8192, %s1093_s28, [#allocation6], %s1013_s15, %s1013_s15, %s1014_s16  }
  0x28   : > { %s881_s7 = scalar_lea.hbm %s1292_s3, 4096 }
  0x29   : > { %p882_p2 = scmp.ne.s32.totalorder %s1292_s3, %s881_s7  ;;  %p888_p10 = scmp.lt.u32.totalorder %s881_s7, %s1292_s3 }
  0x2b   : > { %p884_p1 = pnand %p882_p2, %p855_p13 }
  0x2d   : > { %p885_p6 = pneg %p884_p1 }
  0x2f   : > { %p890_p3 = pnand %p888_p10, %p885_p6 }
  0x31   : > { %893 = shalt.err (!%p890_p3)
}
  0x32   : > { %s894_s28 = scalar_lea.vmem %s1104_s6, 4096  ;;  %p902_p12 = scmp.lt.s32.totalorder %s1104_s6, %s1104_s6 }
  0x33   : > { %p895_p5 = scmp.ne.s32.totalorder %s1104_s6, %s894_s28  ;;  %p903_p0 = scmp.lt.s32.totalorder %s894_s28, %s894_s28 }
  0x35   : > { %p897_p7 = pnand %p895_p5, %p855_p13  ;;  %p904_p2 = por %p903_p0, %p902_p12 }
  0x37   : > { %p898_p9 = pneg %p897_p7 }
  0x39   : > { %p905_p1 = pnand %p904_p2, %p898_p9 }
  0x3b   : > { %908 = shalt.err (!%p905_p1)
}
  0x3c   : > { %s1015_s12 = smov 128   ;;  %s1016_s13 = smov 8  }
  0x3d   : > { %800 = dma.hbm_to_vmem [thread:$0]  (!%p1100_p11), %s1292_s3, 4096, %s1104_s6, [#allocation6], %s1015_s12, %s1015_s12, %s1016_s13  }
  0x3e   : > { %s1159_s16 = sadd.s32 1, %s1009_s21   ;;  %s29_s23 = sadd.s32 1, %s1005_s20 }
  0x3f   : > { %s26_s17 = ssub.s32 %s1009_s21, %s1159_s16  ;;  %p36_p6 = scmp.ne.s32.totalorder %s1005_s20, %s1001_s19 }
  0x40   : > { %p27_p13 = scmp.eq.s32.totalorder %s26_s17, 0  ;;  %p37_p10 = scmp.eq.s32.totalorder %s1009_s21, 0 }
  0x41   : > { %p1302_p5 = scmp.eq.s32.totalorder %s1070_s22, 1  ;;  %p811_p9 = scmp.lt.s32.totalorder %s1009_s21, 2 }
  0x42   : > { %s1168_s27 = scalar_select %p27_p13, %s1005_s20, %s29_s23  }
  0x43   : > { %p38_p3 = por %p37_p10, %p36_p6  ;;  %p1172_p7 = por %p1302_p5, %p36_p6 }
  0x44   : > { %s208_s29 = sand.u32 1, %s1005_s20   ;;  %s650_s6 = sshll.u32 %s1009_s21, 8 }
  0x45   : > { %s1303_s30 = scalar_select %p1172_p7, 1, 0 }
  0x46   : > { %s637_s7 = sshll.u32 %s208_s29, 4  ;;  %s1182_s10 = scalar_lea.hbm %s1289_s0, %s650_s6 }
  0x47   : > { %s212_s11 = scalar_lea.vmem [#allocation2], %s637_s7  ;;  %p1186_p11 = pnand %p811_p9, %p38_p3 }
  0x48   : > { %s220_s28 = sshll.u32 %s212_s11, 4  ;;  %s209_s13 = scalar_lea.sflag [#allocation3], %s208_s29  ;;  %s1184_s28 = int_to_ptr.vmem [resolvable:$true] %s220_s28 }
  0x49   : > { %s909_s14 = scalar_lea.hbm %s1182_s10, 256  ;;  %p911_p0 = pneg %p1186_p11 }
  0x4a   : > { %p910_p12 = scmp.ne.s32.totalorder %s1182_s10, %s909_s14  ;;  %s914_s23 = scalar_lea.hbm %s1289_s0, 512 }
  0x4b   : > { %p915_p13 = scmp.lt.u32.totalorder %s1182_s10, %s1289_s0  ;;  %p916_p6 = scmp.lt.u32.totalorder %s914_s23, %s909_s14 }
  0x4c   : > { %p912_p2 = pnand %p911_p0, %p910_p12  ;;  %p918_p3 = scmp.lt.u32.totalorder %s909_s14, %s1182_s10 }
  0x4d   : > { %p917_p10 = por %p916_p6, %p915_p13 }
  0x4e   : > { %p913_p1 = pneg %p912_p2 }
  0x4f   : > { %p919_p5 = por %p918_p3, %p917_p10 }
  0x51   : > { %p920_p9 = pnand %p919_p5, %p913_p1 }
  0x53   : > { %923 = shalt.err (!%p920_p9)
}
  0x54   : > { %s924_s29 = scalar_lea.vmem %s1184_s28, 256  ;;  %s1017_s8 = smov [#allocation2]  }
  0x55   : > { %p925_p12 = scmp.ne.s32.totalorder %s1184_s28, %s924_s29  ;;  %s929_s9 = sshll.u32 %s1017_s8, 4  ;;  %s930_s9 = int_to_ptr.vmem [resolvable:$false] %s929_s9 }
  0x56   : > { %s931_s11 = scalar_lea.vmem %s930_s9, 512  ;;  %p932_p4 = scmp.lt.s32.totalorder %s1184_s28, %s930_s9 }
  0x57   : > { %p927_p2 = pnand %p925_p12, %p911_p0  ;;  %p933_p13 = scmp.lt.s32.totalorder %s931_s11, %s924_s29 }
  0x59   : > { %p928_p7 = pneg %p927_p2  ;;  %p934_p6 = por %p933_p13, %p932_p4 }
  0x5b   : > { %p935_p10 = pnand %p934_p6, %p928_p7 }
  0x5d   : > { %938 = shalt.err (!%p935_p10)
}
  0x5e   : > { %804 = dma.hbm_to_vmem [thread:$0]  (!%p1186_p11), %s1182_s10, 256, %s1184_s28, %s209_s13  }
  0x5f   : > { %229 = sbr.rel (%p1089_p8) target bundleno = 620 (0x26c), region = 40  ;;  %s1218_s14 = sand.u32 (!%p1089_p8), 1, %s1001_s19  }
  0x60   : > { %s641_s15 = sshll.u32 (!%p1089_p8), %s1218_s14, 4  ;;  %s232_s17 = scalar_lea.sflag (!%p1089_p8), [#allocation3], %s1218_s14 }
  0x61   : > { %s1222_s23 = scalar_lea.vmem (!%p1089_p8), [#allocation2], %s641_s15  ;;  %p1305_p4 = scmp.ne.s32.totalorder (!%p1089_p8), %s1298_s24, 0 }
  0x66   : > { %984 = dma.done.wait (%p1305_p4), %s232_s17, 256  }
  0x67   : > { %986 = vsyncadd (%p1305_p4), %s232_s17, 4294967040  ;;  %p1306_p7 = scmp.eq.s32.totalorder %s1070_s22, 0 }
  0x69   : > { %988 = dma.done.wait (%p1306_p7), [#allocation6], 12288   ;;  %p1307_p8 = pmov %p1306_p7 }
  0x6a   : > { %v273_v0 = vld [vmem:[#allocation5 + $0x8] sm:$0xff]  ;;  %v275_v1 = vld [vmem:[#allocation5 + $0x18] sm:$0xff]  ;;  %v272_v2 = vld [vmem:[#allocation5] sm:$0xff]  ;;  %s644_s10 = sshll.u32 %s1218_s14, 3  ;;  %s647_s13 = sshll.u32 %s1070_s22, 7 }
  0x6b   : > { %990 = vsyncadd (%p1307_p8), [#allocation6], 4294955008  ;;  %v686_v3 = vpack.c.bf16 %v275_v1, %v273_v0  ;;  %v274_v4 = vld [vmem:[#allocation5 + $0x10] sm:$0xff]  ;;  %v277_v5 = vld [vmem:[#allocation5 + $0x28] sm:$0xff]  ;;  %s269_s7 = scalar_lea.vmem [#allocation8], %s644_s10  ;;  %s1245_s9 = scalar_lea.hbm %s1294_s5, %s647_s13 }
  0x6c   : > { %v279_v6 = vld [vmem:[#allocation5 + $0x38] sm:$0xff]  ;;  %v688_v7 = vpack.c.bf16 %v274_v4, %v272_v2  ;;  %v276_v9 = vld [vmem:[#allocation5 + $0x20] sm:$0xff]  ;;  %v278_v10 = vld [vmem:[#allocation5 + $0x30] sm:$0xff]  ;;  %s543_s6 = sshll.u32 %s269_s7, 4  ;;  %s530_s11 = scalar_lea.sflag [#allocation4], %s1218_s14  ;;  %s1247_s6 = int_to_ptr.vmem [resolvable:$true] %s543_s6 }
  0x6d   : > { %v690_v8 = vpack.c.bf16 %v279_v6, %v277_v5  ;;  %v281_v11 = vld [vmem:[#allocation5 + $0x48] sm:$0xff]  ;;  %687 = vmatprep.subr.bf16.mxu0 %v686_v3  ;;  %v283_v12 = vld [vmem:[#allocation5 + $0x58] sm:$0xff]  ;;  %v692_v13 = vpack.c.bf16 %v278_v10, %v276_v9  ;;  %v280_v15 = vld [vmem:[#allocation5 + $0x40] sm:$0xff]  ;;  %s939_s15 = scalar_lea.vmem %s1247_s6, 128  ;;  %p1308_p0 = scmp.ne.s32.totalorder %s1303_s30, 0 }
  0x6e   : > { %689 = vmatpush1.bf16.msra.mxu0 %v688_v7  ;;  %v694_v14 = vpack.c.bf16 %v283_v12, %v281_v11  ;;  %v282_v16 = vld [vmem:[#allocation5 + $0x50] sm:$0xff]  ;;  %v285_v17 = vld [vmem:[#allocation5 + $0x68] sm:$0xff]  ;;  %v287_v18 = vld [vmem:[#allocation5 + $0x78] sm:$0xff]  ;;  %p940_p11 = scmp.ne.s32.totalorder %s1247_s6, %s939_s15  ;;  %s1018_s22 = smov [#allocation8]  }
  0x6f   : > { %691 = vmatprep.subr.bf16.mxu0 %v690_v8  ;;  %v696_v19 = vpack.c.bf16 %v282_v16, %v280_v15  ;;  %v698_v20 = vpack.c.bf16 %v287_v18, %v285_v17  ;;  %v284_v21 = vld [vmem:[#allocation5 + $0x60] sm:$0xff]  ;;  %v286_v22 = vld [vmem:[#allocation5 + $0x70] sm:$0xff]  ;;  %v289_v23 = vld [vmem:[#allocation5 + $0x88] sm:$0xff]  ;;  %s943_s17 = sshll.u32 %s1018_s22, 4  ;;  %s944_s17 = int_to_ptr.vmem [resolvable:$false] %s943_s17 }
  0x70   : > { %v291_v24 = vld [vmem:[#allocation5 + $0x98] sm:$0xff]  ;;  %v700_v25 = vpack.c.bf16 %v286_v22, %v284_v21  ;;  %v288_v27 = vld [vmem:[#allocation5 + $0x80] sm:$0xff]  ;;  %v290_v28 = vld [vmem:[#allocation5 + $0x90] sm:$0xff]  ;;  %p941_p1 = pnand %p940_p11, %p1308_p0  ;;  %p946_p5 = scmp.lt.s32.totalorder %s1247_s6, %s944_s17 }
  0x71   : > { %v702_v26 = vpack.c.bf16 %v291_v24, %v289_v23  ;;  %v293_v29 = vld [vmem:[#allocation5 + $0xa8] sm:$0xff]  ;;  %v295_v30 = vld [vmem:[#allocation5 + $0xb8] sm:$0xff]  ;;  %v704_v31 = vpack.c.bf16 %v290_v28, %v288_v27  ;;  %v292_v33 = vld [vmem:[#allocation5 + $0xa0] sm:$0xff] }
  0x72   : > { %693 = vmatpush1.bf16.msra.mxu0 %v692_v13  ;;  %v706_v32 = vpack.c.bf16 %v295_v30, %v293_v29  ;;  %v294_v34 = vld [vmem:[#allocation5 + $0xb0] sm:$0xff]  ;;  %v297_v35 = vld [vmem:[#allocation5 + $0xc8] sm:$0xff]  ;;  %v299_v36 = vld [vmem:[#allocation5 + $0xd8] sm:$0xff]  ;;  %p942_p3 = pneg %p941_p1 }
  0x73   : > { %695 = vmatprep.subr.bf16.mxu0 %v694_v14  ;;  %v708_v37 = vpack.c.bf16 %v294_v34, %v292_v33  ;;  %v296_v38 = vld [vmem:[#allocation5 + $0xc0] sm:$0xff]  ;;  %v298_v39 = vld [vmem:[#allocation5 + $0xd0] sm:$0xff]  ;;  %v710_v40 = vpack.c.bf16 %v299_v36, %v297_v35  ;;  %v301_v41 = vld [vmem:[#allocation5 + $0xe8] sm:$0xff] }
  0x74   : > { %v303_v42 = vld [vmem:[#allocation5 + $0xf8] sm:$0xff]  ;;  %v435_v44 = vld [vmem:[#allocation7 + $0x80] sm:$0xff]  ;;  %v436_v45 = vld [vmem:[#allocation7 + $0x88] sm:$0xff]  ;;  %v712_v51 = vpack.c.bf16 %v298_v39, %v296_v38 }
  0x75   : > { %v271_v43 = vld [vmem:[%s1222_s23 + $0x8] sm:$0xff]  ;;  %v419_v46 = vld [vmem:[#allocation7] sm:$0xff]  ;;  %v750_v47 = vpack.c.bf16 %v436_v45, %v435_v44  ;;  %v437_v49 = vld [vmem:[#allocation7 + $0x90] sm:$0xff]  ;;  %v714_v57 = vpack.c.bf16 %v303_v42, %v301_v41 }
  0x76   : > { %697 = vmatpush1.bf16.msra.mxu0 %v696_v19  ;;  %412 = vmatprep.mubr.f32.mxu0 %v271_v43  ;;  %v420_v48 = vld [vmem:[#allocation7 + $0x8] sm:$0xff]  ;;  %v438_v50 = vld [vmem:[#allocation7 + $0x98] sm:$0xff]  ;;  %v421_v54 = vld [vmem:[#allocation7 + $0x10] sm:$0xff] }
  0x77   : > { %699 = vmatprep.subr.bf16.mxu0 %v698_v20  ;;  %v752_v52 = vpack.c.bf16 %v420_v48, %v419_v46  ;;  %v754_v53 = vpack.c.bf16 %v438_v50, %v437_v49  ;;  %v422_v55 = vld [vmem:[#allocation7 + $0x18] sm:$0xff]  ;;  %v439_v56 = vld [vmem:[#allocation7 + $0xa0] sm:$0xff]  ;;  %v302_v59 = vld [vmem:[#allocation5 + $0xf0] sm:$0xff]  ;;  %751 = vmatprep.subr.bf16.mxu1 %v750_v47 }
  0x78   : > { %v300_v58 = vld [vmem:[#allocation5 + $0xe0] sm:$0xff]  ;;  %v440_v60 = vld [vmem:[#allocation7 + $0xa8] sm:$0xff]  ;;  %v307_v62 = vld [vmem:[#allocation5 + $0x118] sm:$0xff]  ;;  %v756_v63 = vpack.c.bf16 %v422_v55, %v421_v54 }
  0x79   : > { %v305_v61 = vld [vmem:[#allocation5 + $0x108] sm:$0xff]  ;;  %753 = vmatpush3.bf16.msra.mxu1 %v752_v52  ;;  %v758_v0 = vpack.c.bf16 %v440_v60, %v439_v56  ;;  %v423_v1 = vld [vmem:[#allocation7 + $0x20] sm:$0xff]  ;;  %v716_v3 = vpack.c.bf16 %v302_v59, %v300_v58  ;;  %v441_v4 = vld [vmem:[#allocation7 + $0xb0] sm:$0xff] }
  0x7a   : > { %701 = vmatpush1.bf16.msra.mxu0 %v700_v25  ;;  %755 = vmatprep.subr.bf16.mxu1 %v754_v53  ;;  %v424_v2 = vld [vmem:[#allocation7 + $0x28] sm:$0xff]  ;;  %v442_v5 = vld [vmem:[#allocation7 + $0xb8] sm:$0xff]  ;;  %v718_v6 = vpack.c.bf16 %v307_v62, %v305_v61  ;;  %v304_v7 = vld [vmem:[#allocation5 + $0x100] sm:$0xff] }
  0x7b   : > { %703 = vmatprep.subr.bf16.mxu0 %v702_v26  ;;  %v306_v8 = vld [vmem:[#allocation5 + $0x110] sm:$0xff]  ;;  %v309_v9 = vld [vmem:[#allocation5 + $0x128] sm:$0xff]  ;;  %v311_v10 = vld [vmem:[#allocation5 + $0x138] sm:$0xff]  ;;  %v760_v11 = vpack.c.bf16 %v424_v2, %v423_v1  ;;  %v762_v12 = vpack.c.bf16 %v442_v5, %v441_v4 }
  0x7c   : > { %v425_v13 = vld [vmem:[#allocation7 + $0x30] sm:$0xff]  ;;  %v426_v14 = vld [vmem:[#allocation7 + $0x38] sm:$0xff]  ;;  %v720_v15 = vpack.c.bf16 %v306_v8, %v304_v7  ;;  %v443_v16 = vld [vmem:[#allocation7 + $0xc0] sm:$0xff]  ;;  %v722_v18 = vpack.c.bf16 %v311_v10, %v309_v9 }
  0x7d   : > { %757 = vmatpush3.bf16.msra.mxu1 %v756_v63  ;;  %v444_v17 = vld [vmem:[#allocation7 + $0xc8] sm:$0xff]  ;;  %v308_v19 = vld [vmem:[#allocation5 + $0x120] sm:$0xff]  ;;  %v310_v20 = vld [vmem:[#allocation5 + $0x130] sm:$0xff]  ;;  %v764_v23 = vpack.c.bf16 %v426_v14, %v425_v13 }
  0x7e   : > { %705 = vmatpush1.bf16.msra.mxu0 %v704_v31  ;;  %759 = vmatprep.subr.bf16.mxu1 %v758_v0  ;;  %v313_v21 = vld [vmem:[#allocation5 + $0x148] sm:$0xff]  ;;  %v315_v22 = vld [vmem:[#allocation5 + $0x158] sm:$0xff]  ;;  %v766_v24 = vpack.c.bf16 %v444_v17, %v443_v16  ;;  %v427_v25 = vld [vmem:[#allocation7 + $0x40] sm:$0xff]  ;;  %v724_v27 = vpack.c.bf16 %v310_v20, %v308_v19 }
  0x7f   : > { %707 = vmatprep.subr.bf16.mxu0 %v706_v32  ;;  %v428_v26 = vld [vmem:[#allocation7 + $0x48] sm:$0xff]  ;;  %v445_v28 = vld [vmem:[#allocation7 + $0xd0] sm:$0xff]  ;;  %v446_v29 = vld [vmem:[#allocation7 + $0xd8] sm:$0xff]  ;;  %v726_v30 = vpack.c.bf16 %v315_v22, %v313_v21 }
  0x80   : > { %v312_v31 = vld [vmem:[#allocation5 + $0x140] sm:$0xff]  ;;  %v314_v32 = vld [vmem:[#allocation5 + $0x150] sm:$0xff]  ;;  %v317_v33 = vld [vmem:[#allocation5 + $0x168] sm:$0xff]  ;;  %v768_v35 = vpack.c.bf16 %v428_v26, %v427_v25  ;;  %v770_v36 = vpack.c.bf16 %v446_v29, %v445_v28 }
  0x81   : > { %761 = vmatpush3.bf16.msra.mxu1 %v760_v11  ;;  %v319_v34 = vld [vmem:[#allocation5 + $0x178] sm:$0xff]  ;;  %v728_v39 = vpack.c.bf16 %v314_v32, %v312_v31  ;;  %v448_v41 = vld [vmem:[#allocation7 + $0xe8] sm:$0xff]  ;;  %v316_v43 = vld [vmem:[#allocation5 + $0x160] sm:$0xff] }
  0x82   : > { %709 = vmatpush1.bf16.msra.mxu0 %v708_v37  ;;  %763 = vmatprep.subr.bf16.mxu1 %v762_v12  ;;  %v429_v37 = vld [vmem:[#allocation7 + $0x50] sm:$0xff]  ;;  %v430_v38 = vld [vmem:[#allocation7 + $0x58] sm:$0xff]  ;;  %v730_v42 = vpack.c.bf16 %v319_v34, %v317_v33  ;;  %v321_v45 = vld [vmem:[#allocation5 + $0x188] sm:$0xff] }
  0x83   : > { %711 = vmatprep.subr.bf16.mxu0 %v710_v40  ;;  %v447_v40 = vld [vmem:[#allocation7 + $0xe0] sm:$0xff]  ;;  %v318_v44 = vld [vmem:[#allocation5 + $0x170] sm:$0xff]  ;;  %v323_v46 = vld [vmem:[#allocation5 + $0x198] sm:$0xff]  ;;  %v772_v47 = vpack.c.bf16 %v430_v38, %v429_v37 }
  0x84   : > { %v774_v48 = vpack.c.bf16 %v448_v41, %v447_v40  ;;  %v431_v49 = vld [vmem:[#allocation7 + $0x60] sm:$0xff]  ;;  %v432_v50 = vld [vmem:[#allocation7 + $0x68] sm:$0xff]  ;;  %v734_v52 = vpack.c.bf16 %v323_v46, %v321_v45  ;;  %v322_v54 = vld [vmem:[#allocation5 + $0x190] sm:$0xff] }
  0x85   : > { %765 = vmatpush3.bf16.msra.mxu1 %v764_v23  ;;  %v320_v53 = vld [vmem:[#allocation5 + $0x180] sm:$0xff]  ;;  %v325_v55 = vld [vmem:[#allocation5 + $0x1a8] sm:$0xff]  ;;  %v327_v56 = vld [vmem:[#allocation5 + $0x1b8] sm:$0xff] }
  0x86   : > { %713 = vmatpush1.bf16.msra.mxu0 %v712_v51  ;;  %767 = vmatprep.subr.bf16.mxu1 %v766_v24  ;;  %v732_v51 = vpack.c.bf16 %v318_v44, %v316_v43  ;;  %v736_v58 = vpack.c.bf16 %v322_v54, %v320_v53  ;;  %v738_v59 = vpack.c.bf16 %v327_v56, %v325_v55  ;;  %v324_v60 = vld [vmem:[#allocation5 + $0x1a0] sm:$0xff]  ;;  %v326_v61 = vld [vmem:[#allocation5 + $0x1b0] sm:$0xff]  ;;  %v329_v62 = vld [vmem:[#allocation5 + $0x1c8] sm:$0xff] }
  0x87   : > { %715 = vmatprep.subr.bf16.mxu0 %v714_v57  ;;  %v776_v57 = vpack.c.bf16 %v432_v50, %v431_v49  ;;  %v331_v63 = vld [vmem:[#allocation5 + $0x1d8] sm:$0xff]  ;;  %v740_v0 = vpack.c.bf16 %v326_v61, %v324_v60  ;;  %v328_v2 = vld [vmem:[#allocation5 + $0x1c0] sm:$0xff]  ;;  %v333_v4 = vld [vmem:[#allocation5 + $0x1e8] sm:$0xff] }
  0x88   : > { %v742_v1 = vpack.c.bf16 %v331_v63, %v329_v62  ;;  %v335_v5 = vld [vmem:[#allocation5 + $0x1f8] sm:$0xff]  ;;  %v332_v8 = vld [vmem:[#allocation5 + $0x1e0] sm:$0xff]  ;;  %v334_v9 = vld [vmem:[#allocation5 + $0x1f0] sm:$0xff] }
  0x89   : > { %769 = vmatpush3.bf16.msra.mxu1 %v768_v35  ;;  %v746_v7 = vpack.c.bf16 %v335_v5, %v333_v4  ;;  %v748_v10 = vpack.c.bf16 %v334_v9, %v332_v8  ;;  %v270_v11 = vld [vmem:[%s1222_s23] sm:$0xff]  ;;  %v450_v13 = vld [vmem:[#allocation7 + $0xf8] sm:$0xff]  ;;  %s945_s23 = scalar_lea.vmem %s944_s17, 256 }
  0x8a   : > { %717 = vmatpush1.bf16.msra.mxu0 %v716_v3  ;;  %771 = vmatprep.subr.bf16.mxu1 %v770_v36  ;;  %v330_v3 = vld [vmem:[#allocation5 + $0x1d0] sm:$0xff]  ;;  %v434_v16 = vld [vmem:[#allocation7 + $0x78] sm:$0xff]  ;;  %v336_v21 = vld [vmem:[%s1291_s2] sm:$0x3]  ;;  %p947_p9 = scmp.lt.s32.totalorder %s945_s23, %s939_s15 }
  0x8b   : > { %719 = vmatprep.subr.bf16.mxu0 %v718_v6  ;;  %v744_v6 = vpack.c.bf16 %v330_v3, %v328_v2  ;;  %v449_v12 = vld [vmem:[#allocation7 + $0xf0] sm:$0xff] }
  0x8c   : > { %v778_v14 = vpack.c.bf16 %v450_v13, %v449_v12  ;;  %p948_p12 = por %p947_p9, %p946_p5 }
  0x8d   : > { %773 = vmatpush3.bf16.msra.mxu1 %v772_v47 }
  0x8e   : > { %721 = vmatpush1.bf16.msra.mxu0 %v720_v15  ;;  %775 = vmatprep.subr.bf16.mxu1 %v774_v48  ;;  %v433_v15 = vld [vmem:[#allocation7 + $0x70] sm:$0xff]  ;;  %p949_p2 = pnand %p948_p12, %p942_p3 }
  0x8f   : > { %723 = vmatprep.subr.bf16.mxu0 %v722_v18  ;;  %v780_v17 = vpack.c.bf16 %v434_v16, %v433_v15  ;;  %v338_v18 = vlaneseq }
  0x91   : > { %777 = vmatpush3.bf16.msra.mxu1 %v776_v57  ;;  %v339_v19 = vshrl.u32 %v338_v18, 7 }
  0x92   : > { %725 = vmatpush1.bf16.msra.mxu0 %v724_v27  ;;  %779 = vmatprep.subr.bf16.mxu1 %v778_v14 }
  0x93   : > { %727 = vmatprep.subr.bf16.mxu0 %v726_v30  ;;  %v344_v20 = vsub.s32 1, %v339_v19  ;;  %v340_v22 = vsub.s32 0, %v339_v19  ;;  %v645_v30 = vld [vmem:[%s1293_s4] ss:$0 sm:$0xff] }
  0x95   : > { %781 = vmatpush3.bf16.msra.mxu1 %v780_v17  ;;  %v345_v23 = vrot.slane %v336_v21, %v344_v20  ;;  %v341_v24 = vrot.slane %v336_v21, %v340_v22 }
  0x96   : > { %729 = vmatpush1.bf16.msra.mxu0 %v728_v39 }
  0x97   : > { %731 = vmatprep.subr.bf16.mxu0 %v730_v42 }
  0x9a   : > { %733 = vmatpush1.bf16.msra.mxu0 %v732_v51 }
  0x9b   : > { %735 = vmatprep.subr.bf16.mxu0 %v734_v52 }
  0x9e   : > { %737 = vmatpush1.bf16.msra.mxu0 %v736_v58 }
  0x9f   : > { %739 = vmatprep.subr.bf16.mxu0 %v738_v59 }
  0xa2   : > { %741 = vmatpush1.bf16.msra.mxu0 %v740_v0 }
  0xa3   : > { %743 = vmatprep.subr.bf16.mxu0 %v742_v1 }
  0xa6   : > { %745 = vmatpush1.bf16.msra.mxu0 %v744_v6 }
  0xa7   : > { %747 = vmatprep.subr.bf16.mxu0 %v746_v7 }
  0xaa   : > { %749 = vmatpush1.bf16.msra.mxu0 %v748_v10 }
  0xad   : > { %413 = vmatmul.mubr.f32.vlgmr.msra.gmra.mrb[0].mxu0 %v270_v11 }
 0x180   : > { %v414_v25 = vpop.f32.mrb[0].mxu0 }
 0x181   : > { %v416_v26 = vpop.f32.mrb[1].mxu0  ;;  %v415_v28 = vadd.f32 %v414_v25, %v341_v24 }
 0x182   : > { %v417_v27 = vadd.f32 %v416_v26, %v345_v23 }
 0x184   : > { %522 = vmatprep.mubr.f32.mxu1 %v417_v27 }
 0x185   : > { %523 = vmatmul.mubr.f32.vlgmr.msra.gmra.mrb[0].mxu1 %v415_v28 }
 0x258   : > { %v683_v29 = vpop.f32.mrb[0].mxu1 }
 0x259   : > { %v684_v31 = vpop.f32.mrb[1].mxu1 }
 0x25a   : > { %v685_v32 = vadd.f32 %v684_v31, %v683_v29 }
 0x25c   : > { %v525_v33 = vadd.f32 %v685_v32, %v645_v30 }
 0x25e   : > { %528 = vst [vmem:[%s269_s7] sm:$0xff] %v525_v33 }
 0x25f   : > { %952 = shalt.err (!%p949_p2)
}
 0x260   : > { %s953_s14 = scalar_lea.hbm %s1245_s9, 128  ;;  %s957_s10 = scalar_lea.hbm %s1294_s5, 256 }
 0x261   : > { %p954_p13 = scmp.ne.s32.totalorder %s1245_s9, %s953_s14  ;;  %p958_p4 = scmp.lt.u32.totalorder %s1245_s9, %s1294_s5 }
 0x262   : > { %p959_p7 = scmp.lt.u32.totalorder %s957_s10, %s953_s14  ;;  %p961_p11 = scmp.lt.u32.totalorder %s953_s14, %s1245_s9 }
 0x263   : > { %p955_p6 = pnand %p954_p13, %p1308_p0 }
 0x264   : > { %p960_p8 = por %p959_p7, %p958_p4 }
 0x265   : > { %p956_p10 = pneg %p955_p6 }
 0x266   : > { %p962_p1 = por %p961_p11, %p960_p8 }
 0x268   : > { %p963_p3 = pnand %p962_p1, %p956_p10 }
 0x26a   : > { %966 = shalt.err (!%p963_p3)
}
 0x26b   : > { %792 = dma.vmem_to_hbm [thread:$0]  (%p1308_p0), %s1247_s6, 128, %s1245_s9, %s530_s11  }
 0x26c PF: > { %s555_s13 = sand.u32 1, %s997_s18   ;;  %p1309_p5 = scmp.ne.s32.totalorder %s1299_s25, 0 }
 0x26d   : > { %p1310_p9 = scmp.ge.s32.totalorder %s1009_s21, 2  ;;  %s556_s7 = scalar_lea.sflag [#allocation4], %s555_s13 }
 0x26f   : > { %p806_p12 = pnand %p1310_p9, %p1309_p5 }
 0x271   : > { %992 = dma.done.wait (!%p806_p12), %s556_s7, 128  }
 0x272   : > { %994 = vsyncadd (!%p806_p12), %s556_s7, 4294967168  ;;  %p19_p2 = scmp.ge.s32.totalorder %s1159_s16, 4   ;;  %s1311_s18 = smov %s1001_s19 }
 0x273   : > { %s1312_s19 = smov %s1005_s20  ;;  %s1313_s20 = smov %s1168_s27 }
 0x274   : > { %s1314_s21 = smov %s1159_s16  ;;  %21 = sbr.rel (!%p19_p2) target bundleno = 6 (0x6), region = 93 }
 0x27b   :  { %561 = vsyncpa [#allocation3], 1 }
 0x27c   :  { %563 = vsyncpa [#allocation3 + $0x1], 1 }
 0x27d   :  { %564 = vsyncpa [#allocation6], 1 }
 0x27e   :  { %565 = vsyncpa [#allocation4], 1 }
 0x27f   :  { %567 = vsyncpa [#allocation4 + $0x1], 1 }

</bundles_post_ra>
